<compile_context>
chip_gen: v6e
topology: v6e:2x2x1
jax: 0.10.0
libtpu: 0.0.40
codegen_flags: <defaults>
</compile_context>

<pallas_src>
import functools
import math

import jax
import jax.numpy as jnp
from jax.experimental import pallas as pl
from jax.experimental.pallas import tpu as pltpu


def _round_up(x, m):
    return ((x + m - 1) // m) * m


# ----------------------------------------------------------------------------
# Kernel bodies
# ----------------------------------------------------------------------------

def _copy_kernel(z_ref, o_ref):
    # Input BlockSpec already trimmed the lane axis to exactly the kept
    # columns, so this is a pure VMEM copy (mem-bound, no compute).
    o_ref[...] = z_ref[...]


def _slice_kernel(z_ref, o_ref, *, n_read):
    # Input block lane width was rounded up to a 128-lane multiple (or the
    # full latent dim); drop the extra columns with a static lane slice.
    o_ref[...] = z_ref[:, :n_read]


def _dma_slice_kernel(z_hbm, o_hbm, sem, *, n_read):
    # Direct HBM->HBM rectangular (strided) DMA of exactly the kept columns:
    # no VMEM staging, no grid, no per-step overhead.
    cp = pltpu.make_async_copy(z_hbm.at[:, :n_read], o_hbm, sem)
    cp.start()
    cp.wait()


# ----------------------------------------------------------------------------
# VMEM / tiling plan (generation-aware)
# ----------------------------------------------------------------------------

def _vmem_plan():
    """Returns (block_pair_byte_budget, vmem_limit_bytes)."""
    try:
        cap = pltpu.get_tpu_info().vmem_capacity_bytes
    except Exception:
        cap = None
    if cap is None:
        # Unknown generation: stay v7x-safe.
        return 12 << 20, 32 << 20
    if cap <= (96 << 20):
        # v7x-class: 64 MiB physical VMEM; leave headroom for Mosaic scratch.
        return 16 << 20, 40 << 20
    # v5e / v6e: 128 MiB physical (scoped defaults are 16/32 MiB -> raise it).
    return 24 << 20, 64 << 20


def _choose_row_tile(rows, n_cols_in, n_read, itemsize, budget):
    """Row tile: multiple of the sublane packing factor, sized so the
    double-buffered input+output blocks fit `budget`, and capped so a large
    copy still has >= 8 grid steps (lets v7x's two TCs split the rows)."""
    pack = max(1, 4 // itemsize)           # f32 -> 1, bf16 -> 2, int8/fp8 -> 4
    sublane = 8 * pack
    bytes_per_row = 2 * (n_cols_in + n_read) * itemsize   # 2 buffers per spec
    tr = budget // max(bytes_per_row, 1)
    tr = max(sublane, (tr // sublane) * sublane)

    # Keep several grid steps for megacore when the copy is big enough that
    # the ~0.35us/step overhead is negligible.
    min_steps = 8
    total_bytes = rows * (n_cols_in + n_read) * itemsize
    if total_bytes >= (8 << 20):
        per_step = max(sublane, _round_up(-(-rows // min_steps), sublane))
        tr = min(tr, per_step)

    if rows <= tr:
        return rows                        # full-extent block: no (8,128) rule
    return tr


# ----------------------------------------------------------------------------
# Public wrapper
# ----------------------------------------------------------------------------

def readout_latent_mask(z, n_latents_read, *, force_pallas=False, row_tile=None):
    """Pallas equivalent of ReadoutLatentMask.forward: z[..., :n_latents_read]."""
    *lead, n_latents = z.shape
    n_read = int(n_latents_read)
    if not (0 < n_read <= n_latents):
        raise ValueError("n_latents_read must be in (0, n_latents]")

    if n_read == n_latents:                # identity
        return z

    rows = math.prod(lead) if lead else 1
    itemsize = jnp.dtype(z.dtype).itemsize

    if rows == 0:                          # zero-sized leading dims
        return z[..., :n_read]

    if not force_pallas:
        # Tiny inputs: launch + per-step overhead dwarfs a fusable XLA slice.
        if rows * n_latents * itemsize < (1 << 20):
            return z[..., :n_read]
        # Narrow, lane-misaligned keeps (< 128 lanes): up to 128/n_read HBM
        # read amplification plus masked vst stores -- XLA's slice hits the
        # same roofline and can fuse into the consumer instead.
        if n_read < 128:
            return z[..., :n_read]

    z2 = z.reshape(rows, n_latents)

    aligned = (n_read % 128 == 0)
    kept_row_bytes = n_read * itemsize

    # ---- Path (a): direct HBM->HBM strided DMA, no VMEM bounce. ----
    if aligned and kept_row_bytes >= 512:
        out2 = pl.pallas_call(
            functools.partial(_dma_slice_kernel, n_read=n_read),
            out_shape=jax.ShapeDtypeStruct((rows, n_read), z.dtype),
            in_specs=[pl.BlockSpec(memory_space=pl.ANY)],
            out_specs=pl.BlockSpec(memory_space=pl.ANY),
            scratch_shapes=[pltpu.SemaphoreType.DMA(())],
            cost_estimate=pl.CostEstimate(
                flops=0, transcendentals=0,
                bytes_accessed=int(2 * rows * n_read * itemsize)),
        )(z2)
        return out2.reshape(*lead, n_read)

    # ---- Path (b): pipelined, row-tiled copy / lane-slice. ----
    budget, vmem_limit = _vmem_plan()

    # Lane width actually DMA'd from HBM (satisfies the (8,128)/full-dim rule).
    n_cols_in = min(_round_up(n_read, 128), n_latents)

    pack = max(1, 4 // itemsize)
    sublane = 8 * pack
    if row_tile is not None:
        tr = max(sublane, (int(row_tile) // sublane) * sublane)
        if tr >= rows:
            tr = rows
    else:
        tr = _choose_row_tile(rows, n_cols_in, n_read, itemsize, budget)

    if n_cols_in == n_read:
        kernel = _copy_kernel
    else:
        kernel = functools.partial(_slice_kernel, n_read=n_read)

    out2 = pl.pallas_call(
        kernel,
        out_shape=jax.ShapeDtypeStruct((rows, n_read), z.dtype),
        grid_spec=pl.GridSpec(
            grid=(pl.cdiv(rows, tr),),
            in_specs=[pl.BlockSpec((tr, n_cols_in), lambda i: (i, 0))],
            out_specs=pl.BlockSpec((tr, n_read), lambda i: (i, 0)),
        ),
        compiler_params=pltpu.CompilerParams(
            dimension_semantics=("parallel",),
            vmem_limit_bytes=int(vmem_limit)),
        cost_estimate=pl.CostEstimate(
            flops=0, transcendentals=0,
            bytes_accessed=int(rows * (n_cols_in + n_read) * itemsize)),
    )(z2)

    return out2.reshape(*lead, n_read)


def get_matrix_repr(n_latents, n_latents_read, dtype=jnp.float32):
    """Deterministic, parameter-free matrix representation H (n_read, n_latents)."""
    H = jnp.zeros((n_latents_read, n_latents), dtype=dtype)
    idx = jnp.arange(n_latents_read)
    return H.at[idx, idx].set(1.0)


if __name__ == "__main__":
    # Small shapes consistent with the module: batch=2, seq=8, n_latents=32,
    # keep the first n_latents_read=24 latents.
    B, T, n_latents, n_latents_read = 2, 8, 32, 24
    key = jax.random.PRNGKey(0)
    z = jax.random.normal(key, (B, T, n_latents), dtype=jnp.float32)
    ref = z[..., :n_latents_read]

    # 1) Narrow misaligned keep: exercise the pipelined slice kernel.
    out = jax.block_until_ready(
        readout_latent_mask(z, n_latents_read, force_pallas=True))
    assert out.shape == (B, T, n_latents_read)
    assert jnp.array_equal(out, ref)

    # 2) Default (auto-bypass to the fusable XLA slice) must agree.
    out_auto = jax.block_until_ready(readout_latent_mask(z, n_latents_read))
    assert jnp.array_equal(out_auto, ref)

    # 3) 128-aligned keep with >= 512 B of kept data per row: direct
    #    HBM->HBM strided-DMA path.
    z_dma = jax.random.normal(jax.random.PRNGKey(1), (4, 96, 256), dtype=jnp.float32)
    out_dma = jax.block_until_ready(
        readout_latent_mask(z_dma, 128, force_pallas=True))
    assert jnp.array_equal(out_dma, z_dma[..., :128])

    # 4) 128-aligned keep with < 512 B/row (bf16): pipelined pure-copy path,
    #    multi-step grid via an explicit row tile.
    z_bf = jax.random.normal(jax.random.PRNGKey(2), (4, 96, 256)).astype(jnp.bfloat16)
    out_bf = jax.block_until_ready(
        readout_latent_mask(z_bf, 128, force_pallas=True, row_tile=48))
    assert jnp.array_equal(out_bf, z_bf[..., :128])

    # 5) Wide misaligned keep with a ragged final row block (rows % tile != 0).
    z_rg = jax.random.normal(jax.random.PRNGKey(3), (5, 70, 384), dtype=jnp.float32)
    out_rg = jax.block_until_ready(
        readout_latent_mask(z_rg, 200, force_pallas=True, row_tile=48))
    assert jnp.array_equal(out_rg, z_rg[..., :200])

    # Matrix-representation consistency check (mirrors get_matrix_repr()).
    H = get_matrix_repr(n_latents, n_latents_read)
    assert jnp.allclose(jnp.einsum("btl,rl->btr", z, H), ref)

    print("KERNEL_OK")
</pallas_src>

<mosaic_0001>
module attributes {stable_mosaic.version = 11 : i64} {
  func.func @_slice_kernel(%arg0: i32, %arg1: memref<16x32xf32, #tpu.memory_space<vmem>>, %arg2: memref<16x24xf32, #tpu.memory_space<vmem>>) attributes {dimension_semantics = [#tpu.dimension_semantics<parallel>], iteration_bounds = array<i64: 1>, scalar_prefetch = 0 : i64, scratch_operands = 0 : i64, tpu.core_type = #tpu.core_type<tc>, window_params = [{transform_indices = @transform_0, window_bounds = array<i64: 16, 32>}, {transform_indices = @transform_1, window_bounds = array<i64: 16, 24>}]} {
    %c0 = arith.constant 0 : index
    %c0_0 = arith.constant 0 : index
    %0 = vector.load %arg1[%c0, %c0_0] : memref<16x32xf32, #tpu.memory_space<vmem>>, vector<16x24xf32>
    %c0_1 = arith.constant 0 : index
    %c0_2 = arith.constant 0 : index
    %1 = vector.load %arg2[%c0_1, %c0_2] : memref<16x24xf32, #tpu.memory_space<vmem>>, vector<16x24xf32>
    tpu.vector_store %arg2[%c0_1, %c0_2], %0 {strides = array<i32>} : memref<16x24xf32, #tpu.memory_space<vmem>>, vector<16x24xf32>,
    return
  }
  func.func @transform_0(%arg0: i32) -> (i32, i32) {
    %c0_i32 = arith.constant 0 : i32
    %c0_i32_0 = arith.constant 0 : i32
    return %arg0, %c0_i32 : i32, i32
  }
  func.func @transform_1(%arg0: i32) -> (i32, i32) {
    %c0_i32 = arith.constant 0 : i32
    %c0_i32_0 = arith.constant 0 : i32
    return %arg0, %c0_i32 : i32, i32
  }
}

</mosaic_0001>

<bundles_post_ra>
// kernel: tpu_custom_call.1
= control target key start
LH: loop header
LB: loop body
LE: loop exit
PB: predicated region body
PF: predicated region fallthrough
CT: control target
= control target key end

     0   :  { %6 = vsyncpa [#allocation3], 0  ;;  %s113_s0 = inlined_call_operand.hbm [shape: f32[16,32], index: 0, kind: input, shape index: {}]   ;;  %s114_s1 = inlined_call_operand.hbm [shape: f32[16,24], index: 1, kind: output, shape index: {}]  }
   0x1   :  { %7 = vsyncpa [#allocation4], 0  ;;  %s93_s6 = smov [#allocation2]  }
   0x2   :  { %s13_s7 = sshll.u32 %s93_s6, 4  ;;  %s14_s7 = int_to_ptr.vmem [resolvable:$true] %s13_s7 }
   0x3   :  { %s57_s8 = scalar_lea.vmem %s14_s7, 256  ;;  %p62_p1 = scmp.lt.s32.totalorder %s14_s7, %s14_s7 }
   0x4   :  { %p58_p0 = scmp.ne.s32.totalorder %s14_s7, %s57_s8  ;;  %p63_p2 = scmp.lt.s32.totalorder %s57_s8, %s57_s8 }
   0x6   :  { %p64_p3 = por %p63_p2, %p62_p1 }
   0x8   :  { %p65_p4 = pnand %p64_p3, %p58_p0 }
   0xa   :  { %68 = shalt.err (!%p65_p4)
}
   0xb   :  { %s94_s9 = smov 128   ;;  %s95_s10 = smov 8  }
   0xc   :  { %19 = dma.hbm_to_vmem [thread:$0]  %s113_s0, 256, %s14_s7, [#allocation3], %s94_s9, %s94_s9, %s95_s10  }
   0xd   :  { %89 = dma.done.wait [#allocation3], 256  }
   0xe   :  { %90 = vsyncadd [#allocation3], 4294967040  ;;  %s96_s13 = smov [#allocation5]   ;;  %vm25_vm0 = vcmask 195584   ;;  %v23_v0 = vld [vmem:[#allocation2] sm:$0xff]  ;;  %v24_v1 = vld [vmem:[#allocation2 + $0x8] sm:$0xff] }
   0xf   :  { %s33_s14 = sshll.u32 %s96_s13, 4  ;;  %26 = vst.msk [vmem:[#allocation5] sm:$0xff] %vm25_vm0, %v23_v0  ;;  %27 = vst.msk [vmem:[#allocation5 + $0x8] sm:$0xff] %vm25_vm0, %v24_v1  ;;  %s34_s14 = int_to_ptr.vmem [resolvable:$true] %s33_s14 }
  0x10   :  { %s69_s15 = scalar_lea.vmem %s34_s14, 256  ;;  %p74_p6 = scmp.lt.s32.totalorder %s34_s14, %s34_s14 }
  0x11   :  { %p70_p5 = scmp.ne.s32.totalorder %s34_s14, %s69_s15  ;;  %p75_p7 = scmp.lt.s32.totalorder %s69_s15, %s69_s15 }
  0x13   :  { %p76_p8 = por %p75_p7, %p74_p6 }
  0x15   :  { %p77_p9 = pnand %p76_p8, %p70_p5 }
  0x17   :  { %80 = shalt.err (!%p77_p9)
}
  0x18   :  { %39 = dma.vmem_to_hbm [thread:$0]  %s34_s14, 256, %s114_s1, [#allocation4], %s94_s9, %s94_s9, %s95_s10  }
  0x19   :  { %91 = dma.done.wait [#allocation4], 256  }
  0x1a   :  { %92 = vsyncadd [#allocation4], 4294967040 }
  0x1b   :  { %43 = vsyncpa [#allocation3], 1 }
  0x1c   :  { %44 = vsyncpa [#allocation4], 1 }

</bundles_post_ra>
